<compile_context>
chip_gen: v6e
topology: v6e:2x2x1
jax: 0.10.0
libtpu: 0.0.40
codegen_flags: <defaults>
</compile_context>

<pallas_src>
import jax
import jax.numpy as jnp
from jax.experimental import pallas as pl
from jax.experimental.pallas import tpu as pltpu


def _linear_value_kernel(x_ref, w1_ref, b1_ref, w2_ref, b2_ref, o_ref):
    """Fused: out = (x @ W1 + b1) @ W2 + b2  (LinearValue has no activation)."""
    # feature_mapping
    h = jnp.dot(x_ref[...], w1_ref[...], preferred_element_type=jnp.float32)
    h = h + b1_ref[...]
    # line
    o = jnp.dot(h.astype(w2_ref.dtype), w2_ref[...],
                preferred_element_type=jnp.float32)
    o = o + b2_ref[...]
    o_ref[...] = o.astype(o_ref.dtype)


def linear_value_forward(x, w1, b1, w2, b2, *, block_b=256):
    """Pallas equivalent of LinearValue.forward.

    x  : [B, obs]
    w1 : [obs, feat]   b1 : [1, feat]
    w2 : [feat, 1]     b2 : [1, 1]
    returns [B, 1]
    """
    B, obs = x.shape
    feat = w1.shape[1]
    out_dim = w2.shape[1]

    # Tile the batch only when it is large and cleanly divisible; otherwise
    # process the whole batch in one grid step (full-dim block is always legal).
    if B > block_b and B % block_b == 0:
        bb = block_b
    else:
        bb = B
    grid = (B // bb,)

    return pl.pallas_call(
        _linear_value_kernel,
        out_shape=jax.ShapeDtypeStruct((B, out_dim), x.dtype),
        grid_spec=pltpu.PrefetchScalarGridSpec(
            num_scalar_prefetch=0,
            grid=grid,
            in_specs=[
                pl.BlockSpec((bb, obs), lambda i: (i, 0)),      # x, tiled on batch
                pl.BlockSpec((obs, feat), lambda i: (0, 0)),    # W1, whole
                pl.BlockSpec((1, feat), lambda i: (0, 0)),      # b1, whole
                pl.BlockSpec((feat, out_dim), lambda i: (0, 0)),# W2, whole
                pl.BlockSpec((1, out_dim), lambda i: (0, 0)),   # b2, whole
            ],
            out_specs=pl.BlockSpec((bb, out_dim), lambda i: (i, 0)),
        ),
        compiler_params=pltpu.CompilerParams(
            dimension_semantics=("parallel",)),
    )(x, w1, b1, w2, b2)


def _reference_forward(x, w1, b1, w2, b2):
    """Pure-JAX reference for verification."""
    return (x @ w1 + b1) @ w2 + b2


def make_params(key, obs_size, n_features, dtype=jnp.float32):
    ks = jax.random.split(key, 4)
    s1 = 1.0 / jnp.sqrt(obs_size)
    s2 = 1.0 / jnp.sqrt(n_features)
    return {
        "w1": (jax.random.uniform(ks[0], (obs_size, n_features),
                                  minval=-s1, maxval=s1)).astype(dtype),
        "b1": (jax.random.uniform(ks[1], (1, n_features),
                                  minval=-s1, maxval=s1)).astype(dtype),
        "w2": (jax.random.uniform(ks[2], (n_features, 1),
                                  minval=-s2, maxval=s2)).astype(dtype),
        "b2": (jax.random.uniform(ks[3], (1, 1),
                                  minval=-s2, maxval=s2)).astype(dtype),
    }


if __name__ == "__main__":
    key = jax.random.PRNGKey(0)
    kx, kx2, kp = jax.random.split(key, 3)

    # Small demo shapes consistent with the module:
    # obs_size=16, n_features=128 (lane-dense hidden), batch=8.
    obs_size = 16
    n_features = 128
    batch = 8

    params = make_params(kp, obs_size, n_features)
    x = jax.random.normal(kx, (batch, obs_size), dtype=jnp.float32)

    out = linear_value_forward(x, params["w1"], params["b1"],
                               params["w2"], params["b2"])
    out = jax.block_until_ready(out)
    ref = _reference_forward(x, params["w1"], params["b1"],
                             params["w2"], params["b2"])
    assert out.shape == (batch, 1), out.shape
    assert jnp.max(jnp.abs(out - ref)) < 1e-4

    # Also exercise the batch-tiled path (grid > 1) for correctness.
    big_b = 1024
    xb = jax.random.normal(kx2, (big_b, obs_size), dtype=jnp.float32)
    out_b = linear_value_forward(xb, params["w1"], params["b1"],
                                 params["w2"], params["b2"], block_b=256)
    out_b = jax.block_until_ready(out_b)
    ref_b = _reference_forward(xb, params["w1"], params["b1"],
                               params["w2"], params["b2"])
    assert out_b.shape == (big_b, 1), out_b.shape
    assert jnp.max(jnp.abs(out_b - ref_b)) < 1e-4

    print("KERNEL_OK")
</pallas_src>

<mosaic_0001>
module attributes {stable_mosaic.version = 11 : i64} {
  func.func @_linear_value_kernel(%arg0: i32, %arg1: memref<8x16xf32, #tpu.memory_space<vmem>>, %arg2: memref<16x128xf32, #tpu.memory_space<vmem>>, %arg3: memref<1x128xf32, #tpu.memory_space<vmem>>, %arg4: memref<128x1xf32, #tpu.memory_space<vmem>>, %arg5: memref<1x1xf32, #tpu.memory_space<vmem>>, %arg6: memref<8x1xf32, #tpu.memory_space<vmem>>) attributes {dimension_semantics = [#tpu.dimension_semantics<parallel>], iteration_bounds = array<i64: 1>, scalar_prefetch = 0 : i64, scratch_operands = 0 : i64, tpu.core_type = #tpu.core_type<tc>, window_params = [{transform_indices = @transform_0, window_bounds = array<i64: 8, 16>}, {pipeline_mode = #tpu.pipeline_mode<synchronous>, transform_indices = @transform_1, window_bounds = array<i64: 16, 128>}, {pipeline_mode = #tpu.pipeline_mode<synchronous>, transform_indices = @transform_2, window_bounds = array<i64: 1, 128>}, {pipeline_mode = #tpu.pipeline_mode<synchronous>, transform_indices = @transform_3, window_bounds = array<i64: 128, 1>}, {pipeline_mode = #tpu.pipeline_mode<synchronous>, transform_indices = @transform_4, window_bounds = array<i64: 1, 1>}, {transform_indices = @transform_5, window_bounds = array<i64: 8, 1>}]} {
    %c0 = arith.constant 0 : index
    %c0_0 = arith.constant 0 : index
    %0 = vector.load %arg1[%c0, %c0_0] : memref<8x16xf32, #tpu.memory_space<vmem>>, vector<8x16xf32>
    %c0_1 = arith.constant 0 : index
    %c0_2 = arith.constant 0 : index
    %1 = vector.load %arg2[%c0_1, %c0_2] : memref<16x128xf32, #tpu.memory_space<vmem>>, vector<16x128xf32>
    %cst = arith.constant dense<0.000000e+00> : vector<8x128xf32>
    %2 = tpu.matmul %0, %1, %cst {dimension_numbers = #tpu.dot_dimension_numbers<[1], [0], [0], [1], [0, 0, 1, 1], [], []>} : vector<8x16xf32>, vector<16x128xf32>, vector<8x128xf32> -> vector<8x128xf32>
    %c0_3 = arith.constant 0 : index
    %c0_4 = arith.constant 0 : index
    %3 = vector.load %arg3[%c0_3, %c0_4] : memref<1x128xf32, #tpu.memory_space<vmem>>, vector<1x128xf32>
    %4 = vector.broadcast %3 : vector<1x128xf32> to vector<8x128xf32>
    %5 = arith.addf %2, %4 : vector<8x128xf32>
    %c0_5 = arith.constant 0 : index
    %c0_6 = arith.constant 0 : index
    %6 = vector.load %arg4[%c0_5, %c0_6] : memref<128x1xf32, #tpu.memory_space<vmem>>, vector<128x1xf32>
    %cst_7 = arith.constant dense<0.000000e+00> : vector<8x1xf32>
    %7 = tpu.matmul %5, %6, %cst_7 {dimension_numbers = #tpu.dot_dimension_numbers<[1], [0], [0], [1], [0, 0, 1, 1], [], []>} : vector<8x128xf32>, vector<128x1xf32>, vector<8x1xf32> -> vector<8x1xf32>
    %c0_8 = arith.constant 0 : index
    %c0_9 = arith.constant 0 : index
    %8 = vector.load %arg5[%c0_8, %c0_9] : memref<1x1xf32, #tpu.memory_space<vmem>>, vector<1x1xf32>
    %9 = vector.broadcast %8 : vector<1x1xf32> to vector<8x1xf32>
    %10 = arith.addf %7, %9 : vector<8x1xf32>
    %c0_10 = arith.constant 0 : index
    %c0_11 = arith.constant 0 : index
    %11 = vector.load %arg6[%c0_10, %c0_11] : memref<8x1xf32, #tpu.memory_space<vmem>>, vector<8x1xf32>
    tpu.vector_store %arg6[%c0_10, %c0_11], %10 {strides = array<i32>} : memref<8x1xf32, #tpu.memory_space<vmem>>, vector<8x1xf32>,
    return
  }
  func.func @transform_0(%arg0: i32) -> (i32, i32) {
    %c0_i32 = arith.constant 0 : i32
    %c0_i32_0 = arith.constant 0 : i32
    return %arg0, %c0_i32 : i32, i32
  }
  func.func @transform_1(%arg0: i32) -> (i32, i32) {
    %c0_i32 = arith.constant 0 : i32
    %c0_i32_0 = arith.constant 0 : i32
    %c0_i32_1 = arith.constant 0 : i32
    return %c0_i32, %c0_i32_0 : i32, i32
  }
  func.func @transform_2(%arg0: i32) -> (i32, i32) {
    %c0_i32 = arith.constant 0 : i32
    %c0_i32_0 = arith.constant 0 : i32
    %c0_i32_1 = arith.constant 0 : i32
    return %c0_i32, %c0_i32_0 : i32, i32
  }
  func.func @transform_3(%arg0: i32) -> (i32, i32) {
    %c0_i32 = arith.constant 0 : i32
    %c0_i32_0 = arith.constant 0 : i32
    %c0_i32_1 = arith.constant 0 : i32
    return %c0_i32, %c0_i32_0 : i32, i32
  }
  func.func @transform_4(%arg0: i32) -> (i32, i32) {
    %c0_i32 = arith.constant 0 : i32
    %c0_i32_0 = arith.constant 0 : i32
    %c0_i32_1 = arith.constant 0 : i32
    return %c0_i32, %c0_i32_0 : i32, i32
  }
  func.func @transform_5(%arg0: i32) -> (i32, i32) {
    %c0_i32 = arith.constant 0 : i32
    %c0_i32_0 = arith.constant 0 : i32
    return %arg0, %c0_i32 : i32, i32
  }
}

</mosaic_0001>

<bundles_post_ra>
// kernel: tpu_custom_call.1
= control target key start
LH: loop header
LB: loop body
LE: loop exit
PB: predicated region body
PF: predicated region fallthrough
CT: control target
= control target key end

     0   :  { %v272_v0 = vmov 0.0   ;;  %vm273_vm0 = vmmov 0   ;;  %vm32_vm1 = vcmask 130048   ;;  %vm199_vm2 = vcmask 7168   ;;  %s372_s1 = inlined_call_operand.vmem [shape: f32[16,128], index: 1, kind: input, shape index: {}]   ;;  %s373_s0 = inlined_call_operand.vmem [shape: f32[8,16], index: 0, kind: input, shape index: {}]   ;;  %s374_s3 = inlined_call_operand.vmem [shape: f32[128,1], index: 3, kind: input, shape index: {}]   ;;  %s375_s4 = inlined_call_operand.<no memory space> [shape: f32[1,1], index: 4, kind: input, shape index: {}]   ;;  %s376_s2 = inlined_call_operand.vmem [shape: f32[1,128], index: 2, kind: input, shape index: {}]   ;;  %s377_s5 = inlined_call_operand.vmem [shape: f32[8,1], index: 5, kind: output, shape index: {}]  }
   0x1   :  { %228 = vmatprep.subr.mxu0 %v272_v0  ;;  %v24_v1 = vld [vmem:[%s372_s1 + $0x8] sm:$0xff]  ;;  %v23_v2 = vld [vmem:[%s372_s1] sm:$0xff]  ;;  %232 = vmatprep.mubr.msk.f32.mxu0 %vm273_vm0, %v272_v0  ;;  %v121_v4 = vld [vmem:[%s374_s3 + $0x78] sm:$0xff]  ;;  %v10_v20 = vstv %s375_s4 }
   0x2   :  { %229 = vmatpush3.msra.mxu0 %v24_v1  ;;  %v22_v3 = vld [vmem:[%s373_s0] sm:$0xff]  ;;  %235 = vmatprep.subr.mxu1 %v272_v0  ;;  %v120_v5 = vld [vmem:[%s374_s3 + $0x70] sm:$0xff]  ;;  %v119_v6 = vld [vmem:[%s374_s3 + $0x68] sm:$0xff]  ;;  %11 = vst [vmem:[#allocation2] sm:$0x1] %v10_v20 }
   0x3   :  { %230 = vmatprep.subr.mxu0 %v272_v0  ;;  %236 = vmatpush3.msra.mxu1 %v121_v4  ;;  %v118_v7 = vld [vmem:[%s374_s3 + $0x60] sm:$0xff]  ;;  %v117_v8 = vld [vmem:[%s374_s3 + $0x58] sm:$0xff]  ;;  %v116_v9 = vld [vmem:[%s374_s3 + $0x50] sm:$0xff] }
   0x4   :  { %231 = vmatpush3.msra.mxu0 %v23_v2  ;;  %237 = vmatprep.subr.mxu1 %v272_v0  ;;  %v115_v10 = vld [vmem:[%s374_s3 + $0x48] sm:$0xff]  ;;  %v114_v11 = vld [vmem:[%s374_s3 + $0x40] sm:$0xff]  ;;  %v113_v12 = vld [vmem:[%s374_s3 + $0x38] sm:$0xff] }
   0x5   :  { %233 = vmatmul.mubr.msk.f32.vlgmr.msra.gmra.mxu0 %vm32_vm1, %v22_v3  ;;  %238 = vmatpush3.msra.mxu1 %v120_v5  ;;  %v112_v13 = vld [vmem:[%s374_s3 + $0x30] sm:$0xff]  ;;  %v111_v14 = vld [vmem:[%s374_s3 + $0x28] sm:$0xff]  ;;  %v110_v15 = vld [vmem:[%s374_s3 + $0x20] sm:$0xff] }
   0x6   :  { %239 = vmatprep.subr.mxu1 %v272_v0  ;;  %267 = vmatprep.mubr.msk.f32.mxu1 %vm273_vm0, %v272_v0  ;;  %v109_v16 = vld [vmem:[%s374_s3 + $0x18] sm:$0xff]  ;;  %v108_v17 = vld [vmem:[%s374_s3 + $0x10] sm:$0xff]  ;;  %v107_v18 = vld [vmem:[%s374_s3 + $0x8] sm:$0xff] }
   0x7   :  { %240 = vmatpush3.msra.mxu1 %v119_v6  ;;  %v106_v19 = vld [vmem:[%s374_s3] sm:$0xff] }
   0x8   :  { %241 = vmatprep.subr.mxu1 %v272_v0  ;;  %v205_v21 = vld [vmem:[%s376_s2] ss:$0 sm:$0xff] }
   0x9   :  { %242 = vmatpush3.msra.mxu1 %v118_v7  ;;  %v207_v25 = vld [vmem:[#allocation2] ss:$0 sm:$0xff] }
   0xa   :  { %243 = vmatprep.subr.mxu1 %v272_v0 }
   0xb   :  { %244 = vmatpush3.msra.mxu1 %v117_v8 }
   0xc   :  { %245 = vmatprep.subr.mxu1 %v272_v0 }
   0xd   :  { %246 = vmatpush3.msra.mxu1 %v116_v9 }
   0xe   :  { %247 = vmatprep.subr.mxu1 %v272_v0 }
   0xf   :  { %248 = vmatpush3.msra.mxu1 %v115_v10 }
  0x10   :  { %249 = vmatprep.subr.mxu1 %v272_v0 }
  0x11   :  { %250 = vmatpush3.msra.mxu1 %v114_v11 }
  0x12   :  { %251 = vmatprep.subr.mxu1 %v272_v0 }
  0x13   :  { %252 = vmatpush3.msra.mxu1 %v113_v12 }
  0x14   :  { %253 = vmatprep.subr.mxu1 %v272_v0 }
  0x15   :  { %254 = vmatpush3.msra.mxu1 %v112_v13 }
  0x16   :  { %255 = vmatprep.subr.mxu1 %v272_v0 }
  0x17   :  { %256 = vmatpush3.msra.mxu1 %v111_v14 }
  0x18   :  { %257 = vmatprep.subr.mxu1 %v272_v0 }
  0x19   :  { %258 = vmatpush3.msra.mxu1 %v110_v15 }
  0x1a   :  { %259 = vmatprep.subr.mxu1 %v272_v0 }
  0x1b   :  { %260 = vmatpush3.msra.mxu1 %v109_v16 }
  0x1c   :  { %261 = vmatprep.subr.mxu1 %v272_v0 }
  0x1d   :  { %262 = vmatpush3.msra.mxu1 %v108_v17 }
  0x1e   :  { %263 = vmatprep.subr.mxu1 %v272_v0 }
  0x1f   :  { %264 = vmatpush3.msra.mxu1 %v107_v18 }
  0x20   :  { %265 = vmatprep.subr.mxu1 %v272_v0 }
  0x21   :  { %266 = vmatpush3.msra.mxu1 %v106_v19 }
  0xc5   :  { %v102_v22 = vpop.f32.mrf.mxu0 }
  0xc6   :  { %v103_v23 = vadd.f32 %v205_v21, %v102_v22 }
  0xc7   :  { %v234_v24 = vpop.f32.mrf.mxu0 }
  0xc8   :  { %268 = vmatmul.mubr.f32.vlgmr.msra.gmra.mxu1 %v103_v23 }
 0x188   :  { %v195_v26 = vpop.f32.mrf.mxu1 }
 0x189   :  { %v196_v27 = vadd.f32 %v207_v25, %v195_v26 }
 0x18a   :  { %v269_v28 = vpop.f32.mrf.mxu1 }
 0x18b   :  { %200 = vst.msk [vmem:[%s377_s5] sm:$0xff] %vm199_vm2, %v196_v27 }

</bundles_post_ra>
